<compile_context>
chip_gen: v7x
topology: tpu7x:2x2x1
jax: 0.10.0
libtpu: 0.0.40
codegen_flags: <defaults>
</compile_context>

<pallas_src>
import functools

import jax
import jax.numpy as jnp
from jax.experimental import pallas as pl
from jax.experimental.pallas import tpu as pltpu


def _adaptive_norm_kernel(a_ref, b_ref, w0_ref, x_ref, o_ref,
                          sum_ref, sumsq_ref, scale_ref, shift_ref,
                          *, inv_count, eps):
    """Fused two-pass AdaptiveNorm.

    grid = (2, N, L_tiles)  (all sequential on one TensorCore):
      p == 0 : accumulate per-channel sum / sum(x^2) over every (n, i) tile;
               at the final step fold parameters into per-channel scale/shift.
      p == 1 : out = x * scale + shift.

    a_ref  : (C, 1)  = w1 * gamma
    b_ref  : (C, 1)  = w1 * beta
    w0_ref : (C, 1)  = w0 broadcast per channel
    x_ref / o_ref : (C, tL) blocks of the (N, C, L) activation.
    """
    p = pl.program_id(0)
    n = pl.program_id(1)
    i = pl.program_id(2)
    last_n = pl.num_programs(1) - 1
    last_i = pl.num_programs(2) - 1

    @pl.when((p == 0) & (n == 0) & (i == 0))
    def _init():
        sum_ref[...] = jnp.zeros_like(sum_ref)
        sumsq_ref[...] = jnp.zeros_like(sumsq_ref)

    @pl.when(p == 0)
    def _accumulate():
        xb = x_ref[...].astype(jnp.float32)                       # (C, tL)
        sum_ref[...] += jnp.sum(xb, axis=1, keepdims=True)        # (C, 1)
        sumsq_ref[...] += jnp.sum(xb * xb, axis=1, keepdims=True)

    @pl.when((p == 0) & (n == last_n) & (i == last_i))
    def _fold_params():
        mean = sum_ref[...] * inv_count
        # Biased variance -- exactly what BatchNorm2d uses for normalization.
        var = sumsq_ref[...] * inv_count - mean * mean
        g = a_ref[...] * jax.lax.rsqrt(var + eps)   # w1 * gamma / sqrt(var+eps)
        # y = w0*x + w1*(gamma*(x-mean)/sqrt(var+eps) + beta) = scale*x + shift
        scale_ref[...] = w0_ref[...] + g
        shift_ref[...] = b_ref[...] - g * mean

    @pl.when(p == 1)
    def _apply():
        xb = x_ref[...].astype(jnp.float32)
        o_ref[...] = (xb * scale_ref[...] + shift_ref[...]).astype(o_ref.dtype)


def _choose_lane_tile(L, C, max_block_bytes):
    """Largest 128-multiple that divides L and fits the per-block byte budget."""
    if L % 128 != 0:
        return L                         # full-axis block is always legal
    cap = max(128, (max_block_bytes // (4 * C)) // 128 * 128)
    t = min(L, cap)
    t -= t % 128
    while t > 128 and L % t != 0:
        t -= 128
    return max(t, 128)


def adaptive_norm(x, w0, w1, gamma, beta, eps=1e-3,
                  max_block_bytes=2 * 1024 * 1024):
    """y = w0 * x + w1 * BatchNorm2d(x)   (training-mode batch statistics).

    x: (N, C, H, W); w0, w1: scalars; gamma, beta: (C,) BatchNorm affine params.
    """
    N, C, H, W = x.shape
    L = H * W
    tL = _choose_lane_tile(L, C, max_block_bytes)
    n_tiles = L // tL
    inv_count = 1.0 / float(N * L)

    x3 = x.reshape(N, C, L)                       # free reshape, no transpose

    f32 = jnp.float32
    a = (jnp.asarray(w1, f32) * gamma.astype(f32)).reshape(C, 1)    # w1*gamma
    b = (jnp.asarray(w1, f32) * beta.astype(f32)).reshape(C, 1)     # w1*beta
    w0c = jnp.broadcast_to(jnp.asarray(w0, f32).reshape(1, 1), (C, 1))

    kernel = functools.partial(_adaptive_norm_kernel,
                               inv_count=inv_count, eps=float(eps))

    param_spec = pl.BlockSpec((C, 1), lambda p, n, i: (0, 0))        # resident
    out3 = pl.pallas_call(
        kernel,
        out_shape=jax.ShapeDtypeStruct((N, C, L), x.dtype),
        grid_spec=pltpu.PrefetchScalarGridSpec(
            num_scalar_prefetch=0,
            grid=(2, N, n_tiles),
            in_specs=[
                param_spec,                                              # w1*gamma
                param_spec,                                              # w1*beta
                param_spec,                                              # w0
                pl.BlockSpec((None, C, tL), lambda p, n, i: (n, 0, i)),  # x
            ],
            # During the stats pass (p == 0) the output block index stays at
            # (0, 0, 0) so no garbage tile is ever written back; during the
            # apply pass (p == 1) it walks every (n, i) tile exactly once.
            out_specs=pl.BlockSpec((None, C, tL),
                                   lambda p, n, i: (n * p, 0, i * p)),
            scratch_shapes=[
                pltpu.VMEM((C, 1), jnp.float32),   # per-channel sum
                pltpu.VMEM((C, 1), jnp.float32),   # per-channel sum of squares
                pltpu.VMEM((C, 1), jnp.float32),   # fused scale
                pltpu.VMEM((C, 1), jnp.float32),   # fused shift
            ],
        ),
        compiler_params=pltpu.CompilerParams(
            # The apply pass depends on statistics of the whole batch, so the
            # grid must run sequentially (no megacore split possible here).
            dimension_semantics=("arbitrary", "arbitrary", "arbitrary")),
    )(a, b, w0c, x3)
    return out3.reshape(N, C, H, W)


def adaptive_norm_ref(x, w0, w1, gamma, beta, eps=1e-3):
    """Pure-JAX reference (training-mode BatchNorm2d, biased variance)."""
    mean = x.mean(axis=(0, 2, 3), keepdims=True)
    var = ((x - mean) ** 2).mean(axis=(0, 2, 3), keepdims=True)
    bn = (x - mean) / jnp.sqrt(var + eps)
    bn = bn * gamma.reshape(1, -1, 1, 1) + beta.reshape(1, -1, 1, 1)
    return w0 * x + w1 * bn


if __name__ == "__main__":
    key = jax.random.PRNGKey(0)
    kx, kg, kb = jax.random.split(key, 3)

    N, C, H, W = 2, 16, 32, 32
    x = jax.random.normal(kx, (N, C, H, W), jnp.float32)

    # Non-trivial parameters so the BatchNorm path is actually exercised
    # (at PyTorch init w0=1, w1=0, gamma=1, beta=0 -> identity).
    w0 = jnp.float32(0.7)
    w1 = jnp.float32(0.3)
    gamma = 1.0 + 0.1 * jax.random.normal(kg, (C,), jnp.float32)
    beta = 0.05 * jax.random.normal(kb, (C,), jnp.float32)

    ref = adaptive_norm_ref(x, w0, w1, gamma, beta, eps=1e-3)

    # Run once with the default (single lane tile) config and once with a small
    # block budget to exercise multi-tile accumulation and the output indexing.
    for blk_bytes in (2 * 1024 * 1024, 32 * 1024):
        out = adaptive_norm(x, w0, w1, gamma, beta, eps=1e-3,
                            max_block_bytes=blk_bytes)
        jax.block_until_ready(out)
        assert out.shape == (N, C, H, W), out.shape
        assert bool(jnp.all(jnp.isfinite(out)))
        err = float(jnp.max(jnp.abs(out - ref)))
        assert err < 1e-3, f"max abs error {err} (block budget {blk_bytes})"

    print("KERNEL_OK")
</pallas_src>

<mosaic_0001>
module attributes {stable_mosaic.version = 11 : i64} {
  func.func @_adaptive_norm_kernel(%arg0: i32, %arg1: i32, %arg2: i32, %arg3: memref<16x1xf32, #tpu.memory_space<vmem>>, %arg4: memref<16x1xf32, #tpu.memory_space<vmem>>, %arg5: memref<16x1xf32, #tpu.memory_space<vmem>>, %arg6: memref<1x16x1024xf32, #tpu.memory_space<vmem>>, %arg7: memref<1x16x1024xf32, #tpu.memory_space<vmem>>, %arg8: memref<16x1xf32, #tpu.memory_space<vmem>>, %arg9: memref<16x1xf32, #tpu.memory_space<vmem>>, %arg10: memref<16x1xf32, #tpu.memory_space<vmem>>, %arg11: memref<16x1xf32, #tpu.memory_space<vmem>>) attributes {dimension_semantics = [#tpu.dimension_semantics<arbitrary>, #tpu.dimension_semantics<arbitrary>, #tpu.dimension_semantics<arbitrary>], iteration_bounds = array<i64: 2, 2, 1>, scalar_prefetch = 0 : i64, scratch_operands = 4 : i64, tpu.core_type = #tpu.core_type<tc>, window_params = [{pipeline_mode = #tpu.pipeline_mode<synchronous>, transform_indices = @transform_0, window_bounds = array<i64: 16, 1>}, {pipeline_mode = #tpu.pipeline_mode<synchronous>, transform_indices = @transform_1, window_bounds = array<i64: 16, 1>}, {pipeline_mode = #tpu.pipeline_mode<synchronous>, transform_indices = @transform_2, window_bounds = array<i64: 16, 1>}, {transform_indices = @transform_3, window_bounds = array<i64: 1, 16, 1024>}, {transform_indices = @transform_4, window_bounds = array<i64: 1, 16, 1024>}]} {
    %c0_i32 = arith.constant 0 : i32
    %0 = arith.cmpi eq, %arg0, %c0_i32 : i32
    %c0_i32_0 = arith.constant 0 : i32
    %1 = arith.cmpi eq, %arg1, %c0_i32_0 : i32
    %2 = arith.andi %0, %1 : i1
    %c0_i32_1 = arith.constant 0 : i32
    %3 = arith.cmpi eq, %arg2, %c0_i32_1 : i32
    %4 = arith.andi %2, %3 : i1
    %5 = arith.extui %4 : i1 to i32
    %c0_i32_2 = arith.constant 0 : i32
    %6 = arith.cmpi ne, %5, %c0_i32_2 : i32
    scf.if %6 {
      %cst = arith.constant 0.000000e+00 : f32
      %20 = vector.broadcast %cst : f32 to vector<16x1xf32>
      %c0 = arith.constant 0 : index
      %c0_10 = arith.constant 0 : index
      %21 = vector.load %arg8[%c0, %c0_10] : memref<16x1xf32, #tpu.memory_space<vmem>>, vector<16x1xf32>
      tpu.vector_store %arg8[%c0, %c0_10], %20 {strides = array<i32>} : memref<16x1xf32, #tpu.memory_space<vmem>>, vector<16x1xf32>,
      %cst_11 = arith.constant 0.000000e+00 : f32
      %22 = vector.broadcast %cst_11 : f32 to vector<16x1xf32>
      %c0_12 = arith.constant 0 : index
      %c0_13 = arith.constant 0 : index
      %23 = vector.load %arg9[%c0_12, %c0_13] : memref<16x1xf32, #tpu.memory_space<vmem>>, vector<16x1xf32>
      tpu.vector_store %arg9[%c0_12, %c0_13], %22 {strides = array<i32>} : memref<16x1xf32, #tpu.memory_space<vmem>>, vector<16x1xf32>,
    } else {
    }
    %c0_i32_3 = arith.constant 0 : i32
    %7 = arith.cmpi eq, %arg0, %c0_i32_3 : i32
    %8 = arith.extui %7 : i1 to i32
    %c0_i32_4 = arith.constant 0 : i32
    %9 = arith.cmpi ne, %8, %c0_i32_4 : i32
    scf.if %9 {
      %c0 = arith.constant 0 : index
      %c0_10 = arith.constant 0 : index
      %c0_11 = arith.constant 0 : index
      %20 = vector.load %arg6[%c0, %c0_10, %c0_11] : memref<1x16x1024xf32, #tpu.memory_space<vmem>>, vector<1x16x1024xf32>
      %21 = vector.shape_cast %20 : vector<1x16x1024xf32> to vector<16x1024xf32>
      %c0_12 = arith.constant 0 : index
      %c0_13 = arith.constant 0 : index
      %22 = vector.load %arg8[%c0_12, %c0_13] : memref<16x1xf32, #tpu.memory_space<vmem>>, vector<16x1xf32>
      %cst = arith.constant dense<0.000000e+00> : vector<16xf32>
      %23 = vector.multi_reduction <add>, %21, %cst [1] : vector<16x1024xf32> to vector<16xf32>
      %24 = vector.shape_cast %23 : vector<16xf32> to vector<16x1xf32>
      %25 = arith.addf %22, %24 : vector<16x1xf32>
      %c0_14 = arith.constant 0 : index
      %c0_15 = arith.constant 0 : index
      %26 = vector.load %arg8[%c0_14, %c0_15] : memref<16x1xf32, #tpu.memory_space<vmem>>, vector<16x1xf32>
      tpu.vector_store %arg8[%c0_14, %c0_15], %25 {strides = array<i32>} : memref<16x1xf32, #tpu.memory_space<vmem>>, vector<16x1xf32>,
      %c0_16 = arith.constant 0 : index
      %c0_17 = arith.constant 0 : index
      %27 = vector.load %arg9[%c0_16, %c0_17] : memref<16x1xf32, #tpu.memory_space<vmem>>, vector<16x1xf32>
      %28 = arith.mulf %21, %21 : vector<16x1024xf32>
      %cst_18 = arith.constant dense<0.000000e+00> : vector<16xf32>
      %29 = vector.multi_reduction <add>, %28, %cst_18 [1] : vector<16x1024xf32> to vector<16xf32>
      %30 = vector.shape_cast %29 : vector<16xf32> to vector<16x1xf32>
      %31 = arith.addf %27, %30 : vector<16x1xf32>
      %c0_19 = arith.constant 0 : index
      %c0_20 = arith.constant 0 : index
      %32 = vector.load %arg9[%c0_19, %c0_20] : memref<16x1xf32, #tpu.memory_space<vmem>>, vector<16x1xf32>
      tpu.vector_store %arg9[%c0_19, %c0_20], %31 {strides = array<i32>} : memref<16x1xf32, #tpu.memory_space<vmem>>, vector<16x1xf32>,
    } else {
    }
    %c0_i32_5 = arith.constant 0 : i32
    %10 = arith.cmpi eq, %arg0, %c0_i32_5 : i32
    %c1_i32 = arith.constant 1 : i32
    %11 = arith.cmpi eq, %arg1, %c1_i32 : i32
    %12 = arith.andi %10, %11 : i1
    %c0_i32_6 = arith.constant 0 : i32
    %13 = arith.cmpi eq, %arg2, %c0_i32_6 : i32
    %14 = arith.andi %12, %13 : i1
    %15 = arith.extui %14 : i1 to i32
    %c0_i32_7 = arith.constant 0 : i32
    %16 = arith.cmpi ne, %15, %c0_i32_7 : i32
    scf.if %16 {
      %c0 = arith.constant 0 : index
      %c0_10 = arith.constant 0 : index
      %20 = vector.load %arg8[%c0, %c0_10] : memref<16x1xf32, #tpu.memory_space<vmem>>, vector<16x1xf32>
      %cst = arith.constant 4.8828125E-4 : f32
      %21 = vector.broadcast %cst : f32 to vector<16x1xf32>
      %22 = arith.mulf %20, %21 : vector<16x1xf32>
      %c0_11 = arith.constant 0 : index
      %c0_12 = arith.constant 0 : index
      %23 = vector.load %arg9[%c0_11, %c0_12] : memref<16x1xf32, #tpu.memory_space<vmem>>, vector<16x1xf32>
      %cst_13 = arith.constant 4.8828125E-4 : f32
      %24 = vector.broadcast %cst_13 : f32 to vector<16x1xf32>
      %25 = arith.mulf %23, %24 : vector<16x1xf32>
      %26 = arith.mulf %22, %22 : vector<16x1xf32>
      %27 = arith.subf %25, %26 : vector<16x1xf32>
      %c0_14 = arith.constant 0 : index
      %c0_15 = arith.constant 0 : index
      %28 = vector.load %arg3[%c0_14, %c0_15] : memref<16x1xf32, #tpu.memory_space<vmem>>, vector<16x1xf32>
      %cst_16 = arith.constant 1.000000e-03 : f32
      %29 = vector.broadcast %cst_16 : f32 to vector<16x1xf32>
      %30 = arith.addf %27, %29 : vector<16x1xf32>
      %31 = math.rsqrt %30 : vector<16x1xf32>
      %32 = arith.mulf %28, %31 : vector<16x1xf32>
      %c0_17 = arith.constant 0 : index
      %c0_18 = arith.constant 0 : index
      %33 = vector.load %arg5[%c0_17, %c0_18] : memref<16x1xf32, #tpu.memory_space<vmem>>, vector<16x1xf32>
      %34 = arith.addf %33, %32 : vector<16x1xf32>
      %c0_19 = arith.constant 0 : index
      %c0_20 = arith.constant 0 : index
      %35 = vector.load %arg10[%c0_19, %c0_20] : memref<16x1xf32, #tpu.memory_space<vmem>>, vector<16x1xf32>
      tpu.vector_store %arg10[%c0_19, %c0_20], %34 {strides = array<i32>} : memref<16x1xf32, #tpu.memory_space<vmem>>, vector<16x1xf32>,
      %c0_21 = arith.constant 0 : index
      %c0_22 = arith.constant 0 : index
      %36 = vector.load %arg4[%c0_21, %c0_22] : memref<16x1xf32, #tpu.memory_space<vmem>>, vector<16x1xf32>
      %37 = arith.mulf %32, %22 : vector<16x1xf32>
      %38 = arith.subf %36, %37 : vector<16x1xf32>
      %c0_23 = arith.constant 0 : index
      %c0_24 = arith.constant 0 : index
      %39 = vector.load %arg11[%c0_23, %c0_24] : memref<16x1xf32, #tpu.memory_space<vmem>>, vector<16x1xf32>
      tpu.vector_store %arg11[%c0_23, %c0_24], %38 {strides = array<i32>} : memref<16x1xf32, #tpu.memory_space<vmem>>, vector<16x1xf32>,
    } else {
    }
    %c1_i32_8 = arith.constant 1 : i32
    %17 = arith.cmpi eq, %arg0, %c1_i32_8 : i32
    %18 = arith.extui %17 : i1 to i32
    %c0_i32_9 = arith.constant 0 : i32
    %19 = arith.cmpi ne, %18, %c0_i32_9 : i32
    scf.if %19 {
      %c0 = arith.constant 0 : index
      %c0_10 = arith.constant 0 : index
      %c0_11 = arith.constant 0 : index
      %20 = vector.load %arg6[%c0, %c0_10, %c0_11] : memref<1x16x1024xf32, #tpu.memory_space<vmem>>, vector<1x16x1024xf32>
      %21 = vector.shape_cast %20 : vector<1x16x1024xf32> to vector<16x1024xf32>
      %c0_12 = arith.constant 0 : index
      %c0_13 = arith.constant 0 : index
      %22 = vector.load %arg10[%c0_12, %c0_13] : memref<16x1xf32, #tpu.memory_space<vmem>>, vector<16x1xf32>
      %23 = vector.broadcast %22 : vector<16x1xf32> to vector<16x1024xf32>
      %24 = arith.mulf %21, %23 : vector<16x1024xf32>
      %c0_14 = arith.constant 0 : index
      %c0_15 = arith.constant 0 : index
      %25 = vector.load %arg11[%c0_14, %c0_15] : memref<16x1xf32, #tpu.memory_space<vmem>>, vector<16x1xf32>
      %26 = vector.broadcast %25 : vector<16x1xf32> to vector<16x1024xf32>
      %27 = arith.addf %24, %26 : vector<16x1024xf32>
      %c0_16 = arith.constant 0 : index
      %c0_17 = arith.constant 0 : index
      %c0_18 = arith.constant 0 : index
      %28 = vector.load %arg7[%c0_16, %c0_17, %c0_18] : memref<1x16x1024xf32, #tpu.memory_space<vmem>>, vector<1x16x1024xf32>
      %29 = vector.shape_cast %28 : vector<1x16x1024xf32> to vector<16x1024xf32>
      %30 = vector.shape_cast %27 : vector<16x1024xf32> to vector<1x16x1024xf32>
      tpu.vector_store %arg7[%c0_16, %c0_17, %c0_18], %30 {strides = array<i32>} : memref<1x16x1024xf32, #tpu.memory_space<vmem>>, vector<1x16x1024xf32>,
    } else {
    }
    return
  }
  func.func @transform_0(%arg0: i32, %arg1: i32, %arg2: i32) -> (i32, i32) {
    %c0_i32 = arith.constant 0 : i32
    %c0_i32_0 = arith.constant 0 : i32
    %c0_i32_1 = arith.constant 0 : i32
    return %c0_i32, %c0_i32_0 : i32, i32
  }
  func.func @transform_1(%arg0: i32, %arg1: i32, %arg2: i32) -> (i32, i32) {
    %c0_i32 = arith.constant 0 : i32
    %c0_i32_0 = arith.constant 0 : i32
    %c0_i32_1 = arith.constant 0 : i32
    return %c0_i32, %c0_i32_0 : i32, i32
  }
  func.func @transform_2(%arg0: i32, %arg1: i32, %arg2: i32) -> (i32, i32) {
    %c0_i32 = arith.constant 0 : i32
    %c0_i32_0 = arith.constant 0 : i32
    %c0_i32_1 = arith.constant 0 : i32
    return %c0_i32, %c0_i32_0 : i32, i32
  }
  func.func @transform_3(%arg0: i32, %arg1: i32, %arg2: i32) -> (i32, i32, i32) {
    %c0_i32 = arith.constant 0 : i32
    %c0_i32_0 = arith.constant 0 : i32
    return %arg1, %c0_i32, %arg2 : i32, i32, i32
  }
  func.func @transform_4(%arg0: i32, %arg1: i32, %arg2: i32) -> (i32, i32, i32) {
    %0 = arith.muli %arg1, %arg0 : i32
    %1 = arith.muli %arg2, %arg0 : i32
    %c0_i32 = arith.constant 0 : i32
    %c0_i32_0 = arith.constant 0 : i32
    return %0, %c0_i32, %1 : i32, i32, i32
  }
}

</mosaic_0001>

<bundles_post_ra>
// kernel: tpu_custom_call.1
= control target key start
LH: loop header
LB: loop body
LE: loop exit
PB: predicated region body
PF: predicated region fallthrough
CT: control target
= control target key end

     0   :  { %9 = vsyncpa [#allocation7], 0  ;;  %s1220_s0 = inlined_call_operand.vmem [shape: f32[16,1], index: 0, kind: input, shape index: {}]   ;;  %s1221_s1 = inlined_call_operand.vmem [shape: f32[16,1], index: 1, kind: input, shape index: {}]   ;;  %s1222_s2 = inlined_call_operand.vmem [shape: f32[16,1], index: 2, kind: input, shape index: {}]   ;;  %s1223_s3 = inlined_call_operand.hbm [shape: f32[2,16,1024], index: 3, kind: input, shape index: {}]   ;;  %s1224_s4 = inlined_call_operand.hbm [shape: f32[2,16,1024], index: 4, kind: output, shape index: {}]  }
   0x1   :  { %11 = vsyncpa [#allocation7 + $0x1], 0 }
   0x2   :  { %12 = vsyncpa [#allocation8], 0 }
   0x3   :  { %14 = vsyncpa [#allocation8 + $0x1], 0  ;;  %s914_s15 = smov 0   ;;  %s916_s16 = smov 0  }
   0x4   :  { %s918_s17 = smov 0   ;;  %s920_s18 = smov 0  }
   0x5   :  { %s922_s19 = smov 0   ;;  %s924_s20 = smov 0  }
   0x6   :  { %s926_s21 = smov 0   ;;  %s928_s22 = smov 0  }
   0x7   :  { %s930_s23 = smov 0   ;;  %s932_s24 = smov 0  }
   0x8   :  { %s934_s25 = smov 0  }
   0x9 LB: > { %s592_s26 = sadd.s32 4294967295, %s879_s25   ;;  %s593_s27 = sadd.s32 4294967294, %s879_s25   ;;  %s879_s25 = sphi %s934_s25, %s20_s25   ;;  %s875_s24 = sphi %s932_s24, %s1248_s24   ;;  %s871_s23 = sphi %s930_s23, %s1247_s23   ;;  %s867_s22 = sphi %s928_s22, %s1246_s22   ;;  %s863_s21 = sphi %s926_s21, %s1245_s21   ;;  %s859_s20 = sphi %s924_s20, %s1244_s20   ;;  %s855_s19 = sphi %s922_s19, %s1243_s19   ;;  %s851_s18 = sphi %s920_s18, %s1242_s18   ;;  %s847_s17 = sphi %s918_s17, %s1241_s17   ;;  %s843_s16 = sphi %s916_s16, %s1240_s16   ;;  %s839_s15 = sphi %s914_s15, %s1239_s15  }
   0xa   : > { %s35_s28 = sadd.s32 1, %s871_s23  ;;  %s39_s29 = sadd.s32 1, %s875_s24 }
   0xb   : > { %p37_p0 = scmp.ge.s32.totalorder %s35_s28, 2  ;;  %s111_s30 = sadd.s32 1, %s859_s20 }
   0xc   : > { %p118_p1 = scmp.ne.s32.totalorder %s859_s20, %s855_s19  ;;  %p119_p2 = scmp.eq.s32.totalorder %s879_s25, 0 }
   0xd   : > { %s1250_s28 = smov (%p37_p0, %s35_s28), 0  ;;  %s1252_s29 = smov (!%p37_p0, %s39_s29), %s875_s24 }
   0xe   : > { %1228 = sst [smem:[#allocation12_spill]] %s1250_s28  ;;  %s106_s5 = ssub.s32 %s871_s23, %s1250_s28 }
   0xf   : > { %p980_p3 = por %p119_p2, %p118_p1  ;;  %p41_p4 = scmp.ge.s32.totalorder %s1252_s29, 2 }
  0x10   : > { %p109_p5 = scmp.eq.s32.totalorder %s106_s5, 0  ;;  %p124_p6 = scmp.ne.s32.totalorder %s855_s19, %s851_s18 }
  0x11   : > { %p125_p7 = scmp.eq.s32.totalorder %s592_s26, 0  ;;  %s1254_s29 = smov (%p41_p4, %s1252_s29), 0 }
  0x12   : > { %1230 = sst [smem:[#allocation13_spill]] %s1254_s29  ;;  %s134_s9 = smul.u32 %s871_s23, %s875_s24 }
  0x13   : > { %s988_s7 = scalar_select %p109_p5, %s859_s20, %s111_s30  }
  0x14   : > { %p990_p8 = por %p125_p7, %p124_p6  ;;  %s136_s10 = smul.u32 %s1254_s29, %s1250_s28 }
  0x15   : > { %s143_s11 = sadd.s32 1, %s847_s17  ;;  %p153_p9 = scmp.ne.s32.totalorder %s847_s17, %s843_s16 }
  0x16   : > { %p154_p10 = scmp.eq.s32.totalorder %s592_s26, 3  ;;  %s138_s12 = ssub.s32 %s134_s9, %s136_s10 }
  0x17   : > { %p159_p11 = scmp.ne.s32.totalorder %s843_s16, %s839_s15  ;;  %p141_p12 = scmp.eq.s32.totalorder %s138_s12, 0 }
  0x18   : > { %p1003_p13 = por %p154_p10, %p153_p9  ;;  %p160_p0 = scmp.eq.s32.totalorder %s593_s27, 3 }
  0x19   : > { %s1008_s14 = scalar_select %p141_p12, %s847_s17, %s143_s11  }
  0x1a   : > { %s1232_s13 = scalar_select %p1003_p13, 1, 0 }
  0x1b   : > { %p1010_p1 = por %p160_p0, %p159_p11  ;;  %p625_p2 = scmp.lt.s32.totalorder %s879_s25, 4 }
  0x1c   : > { %s189_s30 = sand.u32 1, %s859_s20   ;;  %s611_s5 = sshll.u32 %s871_s23, 11 }
  0x1d   : > { %s1233_s18 = scalar_select %p1010_p1, 1, 0 }
  0x1e   : > { %s596_s29 = sshll.u32 %s189_s30, 7  ;;  %s1020_s9 = scalar_lea.hbm %s1223_s3, %s611_s5 }
  0x1f   : > { %s193_s27 = scalar_lea.vmem [#allocation6], %s596_s29  ;;  %p1024_p4 = pnand %p625_p2, %p980_p3 }
  0x20   : > { %s202_s10 = sshll.u32 %s193_s27, 4  ;;  %s1030_s12 = scalar_lea.sflag [#allocation7], %s189_s30  ;;  %s1028_s10 = int_to_ptr.vmem [resolvable:$true] %s202_s10 }
  0x21   : > { %s727_s28 = scalar_lea.hbm %s1020_s9, 2048  ;;  %p729_p6 = pneg %p1024_p4 }
  0x22   : > { %p728_p5 = scmp.ne.s32.totalorder %s1020_s9, %s727_s28  ;;  %s732_s5 = scalar_lea.hbm %s1223_s3, 4096 }
  0x23   : > { %p733_p3 = scmp.lt.u32.totalorder %s1020_s9, %s1223_s3  ;;  %p734_p10 = scmp.lt.u32.totalorder %s732_s5, %s727_s28 }
  0x24   : > { %p730_p7 = pnand %p729_p6, %p728_p5  ;;  %p736_p12 = scmp.lt.u32.totalorder %s727_s28, %s1020_s9 }
  0x25   : > { %p735_p11 = por %p734_p10, %p733_p3 }
  0x26   : > { %p731_p9 = pneg %p730_p7 }
  0x27   : > { %p737_p0 = por %p736_p12, %p735_p11 }
  0x29   : > { %p738_p2 = pnand %p737_p0, %p731_p9 }
  0x2b   : > { %741 = shalt.err (!%p738_p2)
}
  0x2c   : > { %s742_s30 = scalar_lea.vmem %s1028_s10, 2048  ;;  %s881_s29 = smov [#allocation6]  }
  0x2d   : > { %p743_p5 = scmp.ne.s32.totalorder %s1028_s10, %s742_s30  ;;  %s747_s6 = sshll.u32 %s881_s29, 4  ;;  %s748_s6 = int_to_ptr.vmem [resolvable:$false] %s747_s6 }
  0x2e   : > { %s749_s26 = scalar_lea.vmem %s748_s6, 4096  ;;  %p750_p13 = scmp.lt.s32.totalorder %s1028_s10, %s748_s6 }
  0x2f   : > { %p745_p7 = pnand %p743_p5, %p729_p6  ;;  %p751_p3 = scmp.lt.s32.totalorder %s749_s26, %s742_s30 }
  0x31   : > { %p746_p1 = pneg %p745_p7  ;;  %p752_p10 = por %p751_p3, %p750_p13 }
  0x33   : > { %p753_p11 = pnand %p752_p10, %p746_p1 }
  0x35   : > { %756 = shalt.err (!%p753_p11)
}
  0x36   : > { %s882_s28 = smov 1024   ;;  %s883_s5 = smov 64  }
  0x37   : > { %620 = dma.hbm_to_vmem [thread:$0]  (!%p1024_p4), %s1020_s9, 2048, %s1028_s10, %s1030_s12, %s882_s28, %s882_s28, %s883_s5  }
  0x38   : > { %p599_p6 = scmp.ge.s32.totalorder %s879_s25, 1  ;;  %p210_p9 = scmp.lt.s32.totalorder %s879_s25, 5 }
  0x3a   : > { %p211_p12 = pnand %p599_p6, %p210_p9 }
  0x3b   : > { %s216_s27 = sand.u32 (!%p211_p12), 1, %s855_s19  }
  0x3c   : > { %214 = sbr.rel (%p211_p12) target bundleno = 450 (0x1c2), region = 36  ;;  %s600_s30 = sshll.u32 (!%p211_p12), %s216_s27, 7 }
  0x3d   : > { %s217_s29 = scalar_lea.sflag (!%p211_p12), [#allocation7], %s216_s27  ;;  %s1061_s6 = scalar_lea.vmem (!%p211_p12), [#allocation6], %s600_s30 }
  0x43   : > { %830 = dma.done.wait (%p990_p8), %s217_s29, 2048  }
  0x44   : > { %832 = vsyncadd (%p990_p8), %s217_s29, 4294965248  ;;  %s242_s9 = sand.u32 1, %s843_s16   ;;  %p249_p13 = scmp.eq.s32.totalorder %s867_s22, 0 }
  0x45   : > { %s601_s10 = sshll.u32 %s242_s9, 7  ;;  %p250_p1 = scmp.eq.s32.totalorder %s863_s21, 0 }
  0x46   : > { %s1074_s11 = scalar_lea.vmem [#allocation9], %s601_s10 }
  0x47   : > { %p251_p4 = pnand %p250_p1, %p249_p13 }
  0x48   : > { %vm258_vm0 = vcmask (!%p251_p4), 7168   ;;  %v884_v0 = vmov (!%p251_p4), 0.0  }
  0x49   : > { %257 = sbr.rel (%p251_p4) target bundleno = 80 (0x50), region = 44  ;;  %259 = vst.msk [vmem:[#allocation2] sm:$0xff] (!%p251_p4), %vm258_vm0, %v884_v0  ;;  %260 = vst.msk [vmem:[#allocation2 + $0x8] sm:$0xff] (!%p251_p4), %vm258_vm0, %v884_v0 }
  0x4a   : > { %261 = vst.msk [vmem:[#allocation3] sm:$0xff] (!%p251_p4), %vm258_vm0, %v884_v0  ;;  %262 = vst.msk [vmem:[#allocation3 + $0x8] sm:$0xff] (!%p251_p4), %vm258_vm0, %v884_v0 }
  0x50 PF: > { %p603_p8 = scmp.ne.s32.totalorder %s867_s22, 0 }
  0x51   : > { %v266_v1 = vld [vmem:[%s1061_s6] sm:$0xff] (!%p603_p8)  ;;  %v267_v2 = vld [vmem:[%s1061_s6 + $0x8] sm:$0xff] (!%p603_p8)  ;;  %v268_v3 = vld [vmem:[%s1061_s6 + $0x10] sm:$0xff] (!%p603_p8)  ;;  %vm304_vm1 = vcmask (!%p603_p8), 7168  }
  0x52   : > { %265 = sbr.rel (%p603_p8) target bundleno = 247 (0xf7), region = 48  ;;  %v269_v4 = vld [vmem:[%s1061_s6 + $0x18] sm:$0xff] (!%p603_p8)  ;;  %v309_v5 = vmul.f32 (!%p603_p8), %v266_v1, %v266_v1  ;;  %v310_v6 = vmul.f32 (!%p603_p8), %v267_v2, %v267_v2  ;;  %v311_v7 = vmul.f32 (!%p603_p8), %v268_v3, %v268_v3  ;;  %v284_v8 = vadd.f32 (!%p603_p8), %v267_v2, %v266_v1  ;;  %v270_v9 = vld [vmem:[%s1061_s6 + $0x20] sm:$0xff] (!%p603_p8)  ;;  %v275_v14 = vld [vmem:[%s1061_s6 + $0x48] sm:$0xff] (!%p603_p8) }
  0x53   : > { %v274_v10 = vld [vmem:[%s1061_s6 + $0x40] sm:$0xff] (!%p603_p8)  ;;  %v312_v11 = vmul.f32 (!%p603_p8), %v269_v4, %v269_v4  ;;  %v276_v15 = vld [vmem:[%s1061_s6 + $0x50] sm:$0xff] (!%p603_p8)  ;;  %v277_v16 = vld [vmem:[%s1061_s6 + $0x58] sm:$0xff] (!%p603_p8)  ;;  %v318_v19 = vmul.f32 (!%p603_p8), %v275_v14, %v275_v14  ;;  %v313_v21 = vmul.f32 (!%p603_p8), %v270_v9, %v270_v9 }
  0x54   : > { %v325_v12 = vadd.f32 (!%p603_p8), %v310_v6, %v309_v5  ;;  %v285_v13 = vadd.f32 (!%p603_p8), %v284_v8, %v268_v3  ;;  %v271_v17 = vld [vmem:[%s1061_s6 + $0x28] sm:$0xff] (!%p603_p8)  ;;  %v317_v18 = vmul.f32 (!%p603_p8), %v274_v10, %v274_v10  ;;  %v319_v20 = vmul.f32 (!%p603_p8), %v276_v15, %v276_v15  ;;  %v278_v24 = vld [vmem:[%s1061_s6 + $0x60] sm:$0xff] (!%p603_p8)  ;;  %v272_v25 = vld [vmem:[%s1061_s6 + $0x30] sm:$0xff] (!%p603_p8) }
  0x55   : > { %v320_v26 = vmul.f32 (!%p603_p8), %v277_v16, %v277_v16  ;;  %v293_v28 = vadd.f32 (!%p603_p8), %v275_v14, %v274_v10  ;;  %v314_v29 = vmul.f32 (!%p603_p8), %v271_v17, %v271_v17  ;;  %v279_v32 = vld [vmem:[%s1061_s6 + $0x68] sm:$0xff] (!%p603_p8)  ;;  %v273_v33 = vld [vmem:[%s1061_s6 + $0x38] sm:$0xff] (!%p603_p8)  ;;  %v321_v34 = vmul.f32 (!%p603_p8), %v278_v24, %v278_v24  ;;  %v280_v40 = vld [vmem:[%s1061_s6 + $0x70] sm:$0xff] (!%p603_p8) }
  0x56   : > { %v326_v22 = vadd.f32 (!%p603_p8), %v325_v12, %v311_v7  ;;  %v286_v23 = vadd.f32 (!%p603_p8), %v285_v13, %v269_v4  ;;  %v334_v27 = vadd.f32 (!%p603_p8), %v318_v19, %v317_v18  ;;  %v315_v37 = vmul.f32 (!%p603_p8), %v272_v25, %v272_v25  ;;  %v281_v47 = vld [vmem:[%s1061_s6 + $0x78] sm:$0xff] (!%p603_p8)  ;;  %v282_v61 = vld [vmem:[#allocation2] sm:$0xff] (!%p603_p8)  ;;  %v307_v62 = vld [vmem:[#allocation3] sm:$0xff] (!%p603_p8) }
  0x57   : > { %v294_v36 = vadd.f32 (!%p603_p8), %v293_v28, %v276_v15  ;;  %v322_v41 = vmul.f32 (!%p603_p8), %v279_v32, %v279_v32  ;;  %v316_v44 = vmul.f32 (!%p603_p8), %v273_v33, %v273_v33  ;;  %v323_v48 = vmul.f32 (!%p603_p8), %v280_v40, %v280_v40  ;;  %v283_v3 = vld [vmem:[#allocation2 + $0x8] sm:$0xff] (!%p603_p8)  ;;  %v308_v4 = vld [vmem:[#allocation3 + $0x8] sm:$0xff] (!%p603_p8) }
  0x58   : > { %v327_v30 = vadd.f32 (!%p603_p8), %v326_v22, %v312_v11  ;;  %v287_v31 = vadd.f32 (!%p603_p8), %v286_v23, %v270_v9  ;;  %v335_v35 = vadd.f32 (!%p603_p8), %v334_v27, %v319_v20  ;;  %v324_v53 = vmul.f32 (!%p603_p8), %v281_v47, %v281_v47 }
  0x59   : > { %v295_v43 = vadd.f32 %v294_v36, %v277_v16 }
  0x5a   : > { %v328_v38 = vadd.f32 %v327_v30, %v313_v21  ;;  %v288_v39 = vadd.f32 %v287_v31, %v271_v17  ;;  %v336_v42 = vadd.f32 %v335_v35, %v320_v26 }
  0x5b   : > { %v296_v50 = vadd.f32 %v295_v43, %v278_v24 }
  0x5c   : > { %v329_v45 = vadd.f32 %v328_v38, %v314_v29  ;;  %v289_v46 = vadd.f32 %v288_v39, %v272_v25  ;;  %v337_v49 = vadd.f32 %v336_v42, %v321_v34 }
  0x5d   : > { %v297_v55 = vadd.f32 %v296_v50, %v279_v32 }
  0x5e   : > { %v330_v51 = vadd.f32 %v329_v45, %v315_v37  ;;  %v290_v52 = vadd.f32 %v289_v46, %v273_v33  ;;  %v338_v54 = vadd.f32 %v337_v49, %v322_v41 }
  0x5f   : > { %v298_v58 = vadd.f32 %v297_v55, %v280_v40 }
  0x60   : > { %v331_v56 = vadd.f32 %v330_v51, %v316_v44  ;;  %291 = vadd.xlane.f32.xlu0 %v290_v52  ;;  %v339_v57 = vadd.f32 %v338_v54, %v323_v48 }
  0x61   : > { %v299_v60 = vadd.f32 %v298_v58, %v281_v47 }
  0x62   : > { %332 = vadd.xlane.f32.xlu1 %v331_v56  ;;  %v340_v59 = vadd.f32 %v339_v57, %v324_v53 }
  0x64   : > { %300 = vadd.xlane.f32.xlu0 %v299_v60 }
  0x66   : > { %341 = vadd.xlane.f32.xlu1 %v340_v59 }
  0xed   : > { %v292_v63 = vpop.xlane.xlu0 %291 }
  0xee   : > { %v302_v0 = vadd.f32 %v292_v63, %v282_v61 }
  0xef   : > { %v333_v1 = vpop.xlane.xlu1 %332 }
  0xf0   : > { %v343_v2 = vadd.f32 %v333_v1, %v307_v62  ;;  %305 = vst.msk [vmem:[#allocation2] sm:$0xff] %vm304_vm1, %v302_v0 }
  0xf1   : > { %v301_v5 = vpop.xlane.xlu0 %300 }
  0xf2   : > { %345 = vst.msk [vmem:[#allocation3] sm:$0xff] %vm304_vm1, %v343_v2  ;;  %v303_v7 = vadd.f32 %v301_v5, %v283_v3 }
  0xf3   : > { %v342_v6 = vpop.xlane.xlu1 %341 }
  0xf4   : > { %v344_v8 = vadd.f32 %v342_v6, %v308_v4  ;;  %306 = vst.msk [vmem:[#allocation2 + $0x8] sm:$0xff] %vm304_vm1, %v303_v7 }
  0xf6   : > { %346 = vst.msk [vmem:[#allocation3 + $0x8] sm:$0xff] %vm304_vm1, %v344_v8 }
  0xf7 PF: > { %p347_p0 = scmp.eq.s32.totalorder %s863_s21, 1 }
  0xf9   : > { %p348_p2 = pnand %p347_p0, %p249_p13 }
  0xfa   : > { %v354_v9 = vld [vmem:[#allocation2] sm:$0xff] (!%p348_p2)  ;;  %v358_v10 = vld [vmem:[#allocation3] sm:$0xff] (!%p348_p2)  ;;  %v367_v24 = vld [vmem:[%s1220_s0 + $0x8] sm:$0xff] (!%p348_p2)  ;;  %vm378_vm2 = vcmask (!%p348_p2), 7168  }
  0xfb   : > { %353 = sbr.rel (%p348_p2) target bundleno = 278 (0x116), region = 52  ;;  %v356_v11 = vmul.f32 (!%p348_p2), 0.00048828125, %v354_v9  ;;  %v360_v12 = vmul.f32 (!%p348_p2), 0.00048828125, %v358_v10  ;;  %v355_v13 = vld [vmem:[#allocation2 + $0x8] sm:$0xff] (!%p348_p2)  ;;  %v366_v23 = vld [vmem:[%s1220_s0] sm:$0xff] (!%p348_p2) }
  0xfc   : > { %v357_v15 = vmul.f32 (!%p348_p2), 0.00048828125, %v355_v13  ;;  %v374_v26 = vld [vmem:[%s1222_s2] sm:$0xff] (!%p348_p2)  ;;  %v375_v29 = vld [vmem:[%s1222_s2 + $0x8] sm:$0xff] (!%p348_p2) }
  0xfd   : > { %v359_v14 = vld [vmem:[#allocation3 + $0x8] sm:$0xff] (!%p348_p2)  ;;  %v362_v17 = vmul.f32 (!%p348_p2), %v356_v11, %v356_v11  ;;  %v381_v31 = vld [vmem:[%s1221_s1] sm:$0xff] (!%p348_p2)  ;;  %v382_v34 = vld [vmem:[%s1221_s1 + $0x8] sm:$0xff] (!%p348_p2) }
  0xfe   : > { %v361_v16 = vmul.f32 (!%p348_p2), 0.00048828125, %v359_v14  ;;  %v363_v18 = vmul.f32 (!%p348_p2), %v357_v15, %v357_v15 }
  0xff   : > { %v364_v19 = vsub.f32 (!%p348_p2), %v360_v12, %v362_v17 }
 0x100   : > { %v365_v20 = vsub.f32 (!%p348_p2), %v361_v16, %v363_v18 }
 0x101   : > { %v368_v21 = vadd.f32 (!%p348_p2), 0.001, %v364_v19 }
 0x102   : > { %v369_v22 = vadd.f32 0.001, %v365_v20 }
 0x103   : > { %721 = vrsqrt.f32 %v368_v21 }
 0x104   : > { %723 = vrsqrt.f32 %v369_v22 }
 0x10d   : > { %v722_v25 = vpop.eup %721 }
 0x10e   : > { %v724_v27 = vpop.eup %723  ;;  %v372_v28 = vmul.f32 %v722_v25, %v366_v23 }
 0x10f   : > { %v373_v30 = vmul.f32 %v724_v27, %v367_v24 }
 0x110   : > { %v376_v32 = vadd.f32 %v374_v26, %v372_v28  ;;  %v383_v33 = vmul.f32 %v372_v28, %v356_v11 }
 0x111   : > { %v377_v35 = vadd.f32 %v375_v29, %v373_v30  ;;  %v384_v36 = vmul.f32 %v373_v30, %v357_v15 }
 0x112   : > { %379 = vst.msk [vmem:[#allocation4] sm:$0xff] %vm378_vm2, %v376_v32  ;;  %v385_v37 = vsub.f32 %v381_v31, %v383_v33 }
 0x113   : > { %380 = vst.msk [vmem:[#allocation4 + $0x8] sm:$0xff] %vm378_vm2, %v377_v35  ;;  %v386_v38 = vsub.f32 %v382_v34, %v384_v36 }
 0x114   : > { %387 = vst.msk [vmem:[#allocation5] sm:$0xff] %vm378_vm2, %v385_v37 }
 0x115   : > { %388 = vst.msk [vmem:[#allocation5 + $0x8] sm:$0xff] %vm378_vm2, %v386_v38 }
 0x116 PF: > { %p605_p5 = scmp.ne.s32.totalorder %s867_s22, 1 }
 0x117   : > { %v885_v41 = vmov (!%p605_p5), 0   ;;  %v393_v44 = vld [vmem:[%s1061_s6] sm:$0xff] (!%p605_p5)  ;;  %v394_v45 = vld [vmem:[%s1061_s6 + $0x8] sm:$0xff] (!%p605_p5)  ;;  %v395_v46 = vld [vmem:[%s1061_s6 + $0x10] sm:$0xff] (!%p605_p5) }
 0x118   : > { %392 = sbr.rel (%p605_p5) target bundleno = 423 (0x1a7), region = 56  ;;  %726 = vset.pattern.permute.xlu1 (!%p605_p5), %v885_v41  ;;  %725 = vset.pattern.permute.xlu0 (!%p605_p5), %v885_v41  ;;  %v396_v47 = vld [vmem:[%s1061_s6 + $0x18] sm:$0xff] (!%p605_p5)  ;;  %v397_v48 = vld [vmem:[%s1061_s6 + $0x20] sm:$0xff] (!%p605_p5)  ;;  %v398_v49 = vld [vmem:[%s1061_s6 + $0x28] sm:$0xff] (!%p605_p5) }
 0x119   : > { %v409_v40 = vld [vmem:[#allocation4] sm:$0xff] (!%p605_p5)  ;;  %v399_v50 = vld [vmem:[%s1061_s6 + $0x30] sm:$0xff] (!%p605_p5)  ;;  %v400_v51 = vld [vmem:[%s1061_s6 + $0x38] sm:$0xff] (!%p605_p5) }
 0x11a   : > { %413 = vperm.xlu0 (!%p605_p5), %725, %v409_v40   ;;  %v410_v43 = vld [vmem:[#allocation4 + $0x8] sm:$0xff] (!%p605_p5)  ;;  %v401_v58 = vld [vmem:[%s1061_s6 + $0x40] sm:$0xff] (!%p605_p5)  ;;  %v403_v0 = vld [vmem:[%s1061_s6 + $0x50] sm:$0xff] (!%p605_p5) }
 0x11b   : > { %v437_v39 = vld [vmem:[#allocation5] sm:$0xff] (!%p605_p5)  ;;  %v402_v59 = vld [vmem:[%s1061_s6 + $0x48] sm:$0xff] (!%p605_p5)  ;;  %v404_v1 = vld [vmem:[%s1061_s6 + $0x58] sm:$0xff] (!%p605_p5) }
 0x11c   : > { %441 = vperm.xlu1 (!%p605_p5), %726, %v437_v39   ;;  %v438_v42 = vld [vmem:[#allocation5 + $0x8] sm:$0xff] (!%p605_p5)  ;;  %v405_v2 = vld [vmem:[%s1061_s6 + $0x60] sm:$0xff] (!%p605_p5)  ;;  %v406_v7 = vld [vmem:[%s1061_s6 + $0x68] sm:$0xff] (!%p605_p5) }
 0x11d   : > { %v407_v8 = vld [vmem:[%s1061_s6 + $0x70] sm:$0xff] (!%p605_p5)  ;;  %v408_v9 = vld [vmem:[%s1061_s6 + $0x78] sm:$0xff] (!%p605_p5) }
 0x11e   : > { %418 = vperm.xlu0 (!%p605_p5), %725, %v410_v43  }
 0x120   : > { %446 = vperm.xlu1 %726, %v438_v42  }
 0x199   : > { %v414_v53 = vpop.permute.xlu0 %413 }
 0x19a   : > { %v421_v54 = vmul.f32 %v414_v53, %v393_v44  ;;  %v422_v55 = vmul.f32 %v414_v53, %v394_v45  ;;  %v423_v56 = vmul.f32 %v414_v53, %v395_v46  ;;  %v424_v57 = vmul.f32 %v414_v53, %v396_v47 }
 0x19b   : > { %v442_v52 = vpop.permute.xlu1 %441  ;;  %v425_v60 = vmul.f32 %v414_v53, %v397_v48  ;;  %v426_v61 = vmul.f32 %v414_v53, %v398_v49  ;;  %v427_v62 = vmul.f32 %v414_v53, %v399_v50  ;;  %v428_v63 = vmul.f32 %v414_v53, %v400_v51 }
 0x19c   : > { %v449_v3 = vadd.f32 %v442_v52, %v421_v54  ;;  %v450_v4 = vadd.f32 %v442_v52, %v422_v55  ;;  %v451_v5 = vadd.f32 %v442_v52, %v423_v56  ;;  %v452_v6 = vadd.f32 %v442_v52, %v424_v57 }
 0x19d   : > { %v453_v10 = vadd.f32 %v442_v52, %v425_v60  ;;  %v454_v11 = vadd.f32 %v442_v52, %v426_v61  ;;  %v455_v12 = vadd.f32 %v442_v52, %v427_v62  ;;  %v456_v13 = vadd.f32 %v442_v52, %v428_v63  ;;  %v419_v14 = vpop.permute.xlu0 %418 }
 0x19e   : > { %465 = vst [vmem:[%s1074_s11] sm:$0xff] %v449_v3  ;;  %466 = vst [vmem:[%s1074_s11 + $0x8] sm:$0xff] %v450_v4  ;;  %v429_v15 = vmul.f32 %v419_v14, %v401_v58  ;;  %v430_v16 = vmul.f32 %v419_v14, %v402_v59  ;;  %v431_v17 = vmul.f32 %v419_v14, %v403_v0 }
 0x19f   : > { %467 = vst [vmem:[%s1074_s11 + $0x10] sm:$0xff] %v451_v5  ;;  %468 = vst [vmem:[%s1074_s11 + $0x18] sm:$0xff] %v452_v6  ;;  %v432_v18 = vmul.f32 %v419_v14, %v404_v1  ;;  %v447_v19 = vpop.permute.xlu1 %446  ;;  %v433_v20 = vmul.f32 %v419_v14, %v405_v2  ;;  %v434_v21 = vmul.f32 %v419_v14, %v406_v7 }
 0x1a0   : > { %469 = vst [vmem:[%s1074_s11 + $0x20] sm:$0xff] %v453_v10  ;;  %470 = vst [vmem:[%s1074_s11 + $0x28] sm:$0xff] %v454_v11  ;;  %v435_v22 = vmul.f32 %v419_v14, %v407_v8  ;;  %v436_v23 = vmul.f32 %v419_v14, %v408_v9  ;;  %v457_v24 = vadd.f32 %v447_v19, %v429_v15 }
 0x1a1   : > { %471 = vst [vmem:[%s1074_s11 + $0x30] sm:$0xff] %v455_v12  ;;  %472 = vst [vmem:[%s1074_s11 + $0x38] sm:$0xff] %v456_v13  ;;  %v458_v25 = vadd.f32 %v447_v19, %v430_v16  ;;  %v459_v26 = vadd.f32 %v447_v19, %v431_v17  ;;  %v460_v27 = vadd.f32 %v447_v19, %v432_v18 }
 0x1a2   : > { %v461_v28 = vadd.f32 %v447_v19, %v433_v20  ;;  %v462_v29 = vadd.f32 %v447_v19, %v434_v21  ;;  %v463_v30 = vadd.f32 %v447_v19, %v435_v22  ;;  %v464_v31 = vadd.f32 %v447_v19, %v436_v23  ;;  %473 = vst [vmem:[%s1074_s11 + $0x40] sm:$0xff] %v457_v24 }
 0x1a3   : > { %474 = vst [vmem:[%s1074_s11 + $0x48] sm:$0xff] %v458_v25  ;;  %475 = vst [vmem:[%s1074_s11 + $0x50] sm:$0xff] %v459_v26 }
 0x1a4   : > { %476 = vst [vmem:[%s1074_s11 + $0x58] sm:$0xff] %v460_v27  ;;  %477 = vst [vmem:[%s1074_s11 + $0x60] sm:$0xff] %v461_v28 }
 0x1a5   : > { %478 = vst [vmem:[%s1074_s11 + $0x68] sm:$0xff] %v462_v29  ;;  %479 = vst [vmem:[%s1074_s11 + $0x70] sm:$0xff] %v463_v30 }
 0x1a6   : > { %480 = vst [vmem:[%s1074_s11 + $0x78] sm:$0xff] %v464_v31 }
 0x1a7 PF: > { %s489_s6 = smul.u32 %s863_s21, %s867_s22  ;;  %s499_s28 = sshll.u32 %s1074_s11, 4  ;;  %s1150_s28 = int_to_ptr.vmem [resolvable:$true] %s499_s28 }
 0x1a8   : > { %s1159_s10 = scalar_lea.sflag [#allocation8], %s242_s9  ;;  %s757_s8 = scalar_lea.vmem %s1150_s28, 2048 }
 0x1a9   : > { %s612_s5 = sshll.u32 %s489_s6, 11  ;;  %p758_p7 = scmp.ne.s32.totalorder %s1150_s28, %s757_s8 }
 0x1aa   : > { %s1155_s29 = scalar_lea.hbm %s1224_s4, %s612_s5  ;;  %p1235_p3 = scmp.ne.s32.totalorder %s1232_s13, 0 }
 0x1ab   : > { %s886_s21 = smov [#allocation9]  }
 0x1ac   : > { %p759_p10 = pnand %p758_p7, %p1235_p3  ;;  %s761_s22 = sshll.u32 %s886_s21, 4  ;;  %s762_s22 = int_to_ptr.vmem [resolvable:$false] %s761_s22 }
 0x1ad   : > { %s763_s11 = scalar_lea.vmem %s762_s22, 4096  ;;  %p764_p6 = scmp.lt.s32.totalorder %s1150_s28, %s762_s22 }
 0x1ae   : > { %p760_p11 = pneg %p759_p10  ;;  %p765_p9 = scmp.lt.s32.totalorder %s763_s11, %s757_s8 }
 0x1b0   : > { %p766_p12 = por %p765_p9, %p764_p6 }
 0x1b2   : > { %p767_p13 = pnand %p766_p12, %p760_p11 }
 0x1b4   : > { %770 = shalt.err (!%p767_p13)
}
 0x1b5   : > { %s771_s9 = scalar_lea.hbm %s1155_s29, 2048  ;;  %s775_s6 = scalar_lea.hbm %s1224_s4, 4096 }
 0x1b6   : > { %p772_p1 = scmp.ne.s32.totalorder %s1155_s29, %s771_s9  ;;  %p776_p0 = scmp.lt.u32.totalorder %s1155_s29, %s1224_s4 }
 0x1b7   : > { %p777_p2 = scmp.lt.u32.totalorder %s775_s6, %s771_s9  ;;  %p779_p7 = scmp.lt.u32.totalorder %s771_s9, %s1155_s29 }
 0x1b8   : > { %p773_p4 = pnand %p772_p1, %p1235_p3 }
 0x1b9   : > { %p778_p5 = por %p777_p2, %p776_p0 }
 0x1ba   : > { %p774_p8 = pneg %p773_p4 }
 0x1bb   : > { %p780_p10 = por %p779_p7, %p778_p5 }
 0x1bd   : > { %p781_p11 = pnand %p780_p10, %p774_p8 }
 0x1bf   : > { %784 = shalt.err (!%p781_p11)
}
 0x1c0   : > { %s887_s30 = smov 1024   ;;  %s888_s8 = smov 64  }
 0x1c1   : > { %615 = dma.vmem_to_hbm [thread:$0]  (%p1235_p3), %s1150_s28, 2048, %s1155_s29, %s1159_s10, %s887_s30, %s887_s30, %s888_s8  }
 0x1c2 PF: > { %p626_p6 = scmp.ge.s32.totalorder %s879_s25, 2  ;;  %s514_s21 = sand.u32 1, %s839_s15  }
 0x1c3   : > { %p1236_p9 = scmp.ne.s32.totalorder %s1233_s18, 0  ;;  %s515_s22 = scalar_lea.sflag [#allocation8], %s514_s21 }
 0x1c5   : > { %p622_p12 = pnand %p626_p6, %p1236_p9 }
 0x1c7   : > { %834 = dma.done.wait (!%p622_p12), %s515_s22, 2048  }
 0x1c8   : > { %836 = vsyncadd (!%p622_p12), %s515_s22, 4294965248  ;;  %s20_s25 = sadd.s32 1, %s879_s25   ;;  %s1237_s13 = sld [smem:[#allocation12_spill]] }
 0x1c9   : > { %p17_p13 = scmp.ge.s32.totalorder %s20_s25, 6   ;;  %s1238_s28 = sld [smem:[#allocation13_spill]] }
 0x1ca   : > { %s1239_s15 = smov %s843_s16  ;;  %s1240_s16 = smov %s847_s17 }
 0x1cb   : > { %s1241_s17 = smov %s1008_s14  ;;  %s1242_s18 = smov %s855_s19 }
 0x1cc   : > { %s1243_s19 = smov %s859_s20  ;;  %s1244_s20 = smov %s988_s7 }
 0x1cd   : > { %s1245_s21 = smov %s871_s23  ;;  %s1246_s22 = smov %s875_s24 }
 0x1ce   : > { %s1247_s23 = smov %s1237_s13  ;;  %19 = sbr.rel (!%p17_p13) target bundleno = 9 (0x9), region = 97 }
 0x1cf   : > { %s1248_s24 = smov %s1238_s28 }
 0x1d5   :  { %520 = vsyncpa [#allocation7], 1 }
 0x1d6   :  { %522 = vsyncpa [#allocation7 + $0x1], 1 }
 0x1d7   :  { %523 = vsyncpa [#allocation8], 1 }
 0x1d8   :  { %525 = vsyncpa [#allocation8 + $0x1], 1 }

</bundles_post_ra>
